<compile_context>
chip_gen: v6e
topology: v6e:2x2x1
jax: 0.10.0
libtpu: 0.0.40
codegen_flags: <defaults>
</compile_context>

<pallas_src>
import functools

import jax
import jax.numpy as jnp
from jax.experimental import pallas as pl
from jax.experimental.pallas import tpu as pltpu

_EPS = 1e-8
_LANE = 128
_SUBLANE = 8

# Tunables (bytes).
_SMALL_TOTAL_BYTES = 2 * 1024 * 1024      # below this: single-step kernel
_TARGET_STEP_BYTES = 4 * 1024 * 1024      # fresh DMA per grid step (both inputs)
_VMEM_INPUT_BUDGET = 24 * 1024 * 1024     # 2 inputs x 2 pipeline buffers resident
_VMEM_LIMIT_BYTES = 40 * 1024 * 1024      # explicit scoped-VMEM limit (v5e..v7x safe)


def _ceil_div(a: int, b: int) -> int:
    return -(-a // b)


def _round_up(a: int, b: int) -> int:
    return _ceil_div(a, b) * b


def _psnr_kernel(t_ref, r_ref, o_ref, acc_ref, *, total_elems: float):
    """Grid = (batch_blocks, k_blocks); k walks lane-group chunks of one image.

    t_ref / r_ref : (n_blk, GB, 128) native-dtype image chunks.
    acc_ref       : (n_blk, 128) f32 scratch — lane-dense partial SSE.
    o_ref         : (1, n_blk, 1) f32 — written only in the finalize branch.
    """
    k = pl.program_id(1)

    @pl.when(k == 0)
    def _init():
        acc_ref[...] = jnp.zeros_like(acc_ref)

    d = t_ref[...].astype(jnp.float32) - r_ref[...].astype(jnp.float32)
    # Sublane reduction keeps the per-step store 128-lane dense (no masked vst).
    acc_ref[...] += jnp.sum(d * d, axis=1)

    @pl.when(k == pl.num_programs(1) - 1)
    def _finalize():
        sse = jnp.sum(acc_ref[...], axis=-1, keepdims=True)          # (n_blk, 1)
        mse = sse / jnp.float32(total_elems) + jnp.float32(_EPS)
        # 10 * log10(1 / mse) == -10 * ln(mse) / ln(10)
        psnr = (-10.0 / jnp.log(10.0)) * jnp.log(mse)
        o_ref[...] = psnr[None, :, :]


def psnr_pallas(target: jax.Array, ref: jax.Array) -> jax.Array:
    """target, ref: (N, C, H, W) images in [0, 1]. Returns (N,) PSNR values."""
    assert target.shape == ref.shape, "FR metric needs matching target/ref shapes"
    n, c, h, w = target.shape
    chw = c * h * w
    dtype = target.dtype                      # keep native dtype (bf16 stays bf16)
    if ref.dtype != dtype:
        ref = ref.astype(dtype)
    itemsize = jnp.dtype(dtype).itemsize

    g_total = _ceil_div(chw, _LANE)           # 128-lane groups per image
    total_bytes = 2 * n * chw * itemsize

    if total_bytes <= _SMALL_TOTAL_BYTES:
        # Tiny input: one grid step, full-array blocks, no pipelining overhead.
        num_b, n_blk = 1, n
        k_steps, gb = 1, g_total
    else:
        # Batch-parallel axis (2 blocks → both v7x TensorCores participate);
        # grow num_b further only if a minimum-size block would blow VMEM.
        max_n_blk = max(1, _VMEM_INPUT_BUDGET // (2 * 2 * _SUBLANE * _LANE * itemsize))
        num_b = max(2 if n >= 2 else 1, _ceil_div(n, max_n_blk))
        n_blk = _ceil_div(n, num_b)

        # Lane-group block size: big enough to amortize per-step overhead,
        # small enough that double-buffered inputs fit the VMEM budget.
        step_unit = 2 * n_blk * _LANE * itemsize          # bytes / group / step
        gb_cap = max(_SUBLANE, min(_TARGET_STEP_BYTES // step_unit,
                                   _VMEM_INPUT_BUDGET // (2 * step_unit)))
        if gb_cap >= g_total:
            k_steps, gb = 1, g_total
        else:
            k_steps = _ceil_div(g_total, gb_cap)
            gb = _round_up(_ceil_div(g_total, k_steps), _SUBLANE)

    g_pad = gb * k_steps
    n_pad = n_blk * num_b

    t2 = target.reshape(n, chw)
    r2 = ref.reshape(n, chw)
    pad_n = n_pad - n
    pad_e = g_pad * _LANE - chw
    if pad_n or pad_e:
        # Zero-pad BOTH inputs: padded diffs are 0, so the SSE is unchanged.
        t2 = jnp.pad(t2, ((0, pad_n), (0, pad_e)))
        r2 = jnp.pad(r2, ((0, pad_n), (0, pad_e)))
    t3 = t2.reshape(n_pad, g_pad, _LANE)
    r3 = r2.reshape(n_pad, g_pad, _LANE)

    kernel = functools.partial(_psnr_kernel, total_elems=float(chw))

    out = pl.pallas_call(
        kernel,
        out_shape=jax.ShapeDtypeStruct((num_b, n_blk, 1), jnp.float32),
        grid_spec=pltpu.PrefetchScalarGridSpec(
            num_scalar_prefetch=0,
            grid=(num_b, k_steps),
            in_specs=[
                pl.BlockSpec((n_blk, gb, _LANE), lambda b, k: (b, k, 0)),
                pl.BlockSpec((n_blk, gb, _LANE), lambda b, k: (b, k, 0)),
            ],
            out_specs=pl.BlockSpec((1, n_blk, 1), lambda b, k: (b, 0, 0)),
            scratch_shapes=[pltpu.VMEM((n_blk, _LANE), jnp.float32)],
        ),
        compiler_params=pltpu.CompilerParams(
            dimension_semantics=("parallel", "arbitrary"),
            vmem_limit_bytes=_VMEM_LIMIT_BYTES,
        ),
    )(t3, r3)
    return out.reshape(n_pad)[:n]


class CustomInferenceModelJAX:
    """JAX/Pallas port of CustomInferenceModel(metric_name='psnr').

    metric_mode='FR', lower_better=False.  PSNR's "net" is parameter-free,
    so there is nothing to load / initialize.
    """

    # TODO(synk): only the parameter-free 'psnr' FR metric is implemented; other
    # registry metrics (learned networks, fid, inception_score) are out of scope.

    def __init__(self, metric_name="psnr", as_loss=False, loss_weight=None,
                 loss_reduction="mean", seed=123):
        assert metric_name == "psnr", "only the 'psnr' FR metric is implemented"
        self.metric_name = metric_name
        self.metric_mode = "FR"
        self.lower_better = False
        self.as_loss = as_loss
        self.loss_weight = loss_weight
        self.loss_reduction = loss_reduction
        self.seed = seed

    def __call__(self, target, ref=None):
        assert ref is not None, "Please specify reference image for Full Reference metric"
        output = psnr_pallas(target, ref)  # (N,)
        if self.as_loss:
            # weight_reduce_loss(output, loss_weight, loss_reduction)
            if self.loss_weight is not None:
                output = output * self.loss_weight
            if self.loss_reduction == "mean":
                output = jnp.mean(output)
            elif self.loss_reduction == "sum":
                output = jnp.sum(output)
            return output
        return output


def _jax_reference(target, ref):
    mse = jnp.mean((target.astype(jnp.float32) - ref.astype(jnp.float32)) ** 2,
                   axis=(1, 2, 3))
    return 10.0 * jnp.log10(1.0 / (mse + _EPS))


if __name__ == "__main__":
    key = jax.random.PRNGKey(0)
    model = CustomInferenceModelJAX(metric_name="psnr", as_loss=False)

    # --- Case 1: small, lane-aligned (batch=2, C=3, 16x16) → single-step path.
    k1, k2, k3, k4, k5, k6 = jax.random.split(key, 6)
    target = jax.random.uniform(k1, (2, 3, 16, 16), dtype=jnp.float32)
    ref = jnp.clip(target + 0.05 * jax.random.normal(k2, target.shape, jnp.float32),
                   0.0, 1.0)
    out = model(target, ref)
    jax.block_until_ready(out)
    exp = _jax_reference(target, ref)
    assert out.shape == (2,)
    assert jnp.allclose(out, exp, rtol=1e-4, atol=1e-3), (out, exp)

    # --- Case 2: unaligned C*H*W (needs zero-padding), still small path.
    t2 = jax.random.uniform(k3, (3, 3, 33, 17), dtype=jnp.float32)
    r2 = jnp.clip(t2 + 0.03 * jax.random.normal(k4, t2.shape, jnp.float32), 0.0, 1.0)
    o2 = model(t2, r2)
    jax.block_until_ready(o2)
    e2 = _jax_reference(t2, r2)
    assert o2.shape == (3,)
    assert jnp.allclose(o2, e2, rtol=1e-4, atol=1e-3), (o2, e2)

    # --- Case 3: large enough to hit the batch-parallel / wide-block path.
    t3 = jax.random.uniform(k5, (2, 3, 256, 256), dtype=jnp.float32)
    r3 = jnp.clip(t3 + 0.02 * jax.random.normal(k6, t3.shape, jnp.float32), 0.0, 1.0)
    o3 = model(t3, r3)
    jax.block_until_ready(o3)
    e3 = _jax_reference(t3, r3)
    assert o3.shape == (2,)
    assert jnp.allclose(o3, e3, rtol=1e-4, atol=1e-3), (o3, e3)

    # as_loss path (scalar mean), plain-JAX glue on top of the kernel output.
    loss_model = CustomInferenceModelJAX(metric_name="psnr", as_loss=True)
    loss = loss_model(target, ref)
    jax.block_until_ready(loss)
    assert loss.shape == ()

    print("KERNEL_OK")
</pallas_src>

<mosaic_0001>
module attributes {stable_mosaic.version = 11 : i64} {
  func.func @_psnr_kernel(%arg0: i32, %arg1: i32, %arg2: memref<2x6x128xf32, #tpu.memory_space<vmem>>, %arg3: memref<2x6x128xf32, #tpu.memory_space<vmem>>, %arg4: memref<1x2x1xf32, #tpu.memory_space<vmem>>, %arg5: memref<2x128xf32, #tpu.memory_space<vmem>>) attributes {dimension_semantics = [#tpu.dimension_semantics<parallel>, #tpu.dimension_semantics<arbitrary>], iteration_bounds = array<i64: 1, 1>, scalar_prefetch = 0 : i64, scratch_operands = 1 : i64, tpu.core_type = #tpu.core_type<tc>, window_params = [{transform_indices = @transform_0, window_bounds = array<i64: 2, 6, 128>}, {transform_indices = @transform_1, window_bounds = array<i64: 2, 6, 128>}, {transform_indices = @transform_2, window_bounds = array<i64: 1, 2, 1>}]} {
    %c0_i32 = arith.constant 0 : i32
    %0 = arith.cmpi eq, %arg1, %c0_i32 : i32
    %1 = arith.extui %0 : i1 to i32
    %c0_i32_0 = arith.constant 0 : i32
    %2 = arith.cmpi ne, %1, %c0_i32_0 : i32
    scf.if %2 {
      %cst_12 = arith.constant 0.000000e+00 : f32
      %14 = vector.broadcast %cst_12 : f32 to vector<2x128xf32>
      %c0_13 = arith.constant 0 : index
      %c0_14 = arith.constant 0 : index
      %15 = vector.load %arg5[%c0_13, %c0_14] : memref<2x128xf32, #tpu.memory_space<vmem>>, vector<2x128xf32>
      tpu.vector_store %arg5[%c0_13, %c0_14], %14 {strides = array<i32>} : memref<2x128xf32, #tpu.memory_space<vmem>>, vector<2x128xf32>,
    } else {
    }
    %c0 = arith.constant 0 : index
    %c0_1 = arith.constant 0 : index
    %c0_2 = arith.constant 0 : index
    %3 = vector.load %arg2[%c0, %c0_1, %c0_2] : memref<2x6x128xf32, #tpu.memory_space<vmem>>, vector<2x6x128xf32>
    %c0_3 = arith.constant 0 : index
    %c0_4 = arith.constant 0 : index
    %c0_5 = arith.constant 0 : index
    %4 = vector.load %arg3[%c0_3, %c0_4, %c0_5] : memref<2x6x128xf32, #tpu.memory_space<vmem>>, vector<2x6x128xf32>
    %5 = arith.subf %3, %4 : vector<2x6x128xf32>
    %c0_6 = arith.constant 0 : index
    %c0_7 = arith.constant 0 : index
    %6 = vector.load %arg5[%c0_6, %c0_7] : memref<2x128xf32, #tpu.memory_space<vmem>>, vector<2x128xf32>
    %7 = arith.mulf %5, %5 : vector<2x6x128xf32>
    %cst = arith.constant dense<0.000000e+00> : vector<2x128xf32>
    %8 = vector.multi_reduction <add>, %7, %cst [1] : vector<2x6x128xf32> to vector<2x128xf32>
    %9 = arith.addf %6, %8 : vector<2x128xf32>
    %c0_8 = arith.constant 0 : index
    %c0_9 = arith.constant 0 : index
    %10 = vector.load %arg5[%c0_8, %c0_9] : memref<2x128xf32, #tpu.memory_space<vmem>>, vector<2x128xf32>
    tpu.vector_store %arg5[%c0_8, %c0_9], %9 {strides = array<i32>} : memref<2x128xf32, #tpu.memory_space<vmem>>, vector<2x128xf32>,
    %c0_i32_10 = arith.constant 0 : i32
    %11 = arith.cmpi eq, %arg1, %c0_i32_10 : i32
    %12 = arith.extui %11 : i1 to i32
    %c0_i32_11 = arith.constant 0 : i32
    %13 = arith.cmpi ne, %12, %c0_i32_11 : i32
    scf.if %13 {
      %c0_12 = arith.constant 0 : index
      %c0_13 = arith.constant 0 : index
      %14 = vector.load %arg5[%c0_12, %c0_13] : memref<2x128xf32, #tpu.memory_space<vmem>>, vector<2x128xf32>
      %cst_14 = arith.constant dense<0.000000e+00> : vector<2xf32>
      %15 = vector.multi_reduction <add>, %14, %cst_14 [1] : vector<2x128xf32> to vector<2xf32>
      %16 = vector.shape_cast %15 : vector<2xf32> to vector<2x1xf32>
      %cst_15 = arith.constant 7.680000e+02 : f32
      %17 = vector.broadcast %cst_15 : f32 to vector<2x1xf32>
      %18 = arith.divf %16, %17 : vector<2x1xf32>
      %cst_16 = arith.constant 9.99999993E-9 : f32
      %19 = vector.broadcast %cst_16 : f32 to vector<2x1xf32>
      %20 = arith.addf %18, %19 : vector<2x1xf32>
      %cst_17 = arith.constant 1.000000e+01 : f32
      %21 = math.log %cst_17 : f32
      %cst_18 = arith.constant -1.000000e+01 : f32
      %22 = arith.divf %cst_18, %21 : f32
      %23 = math.log %20 : vector<2x1xf32>
      %24 = vector.broadcast %22 : f32 to vector<2x1xf32>
      %25 = arith.mulf %24, %23 : vector<2x1xf32>
      %26 = vector.shape_cast %25 : vector<2x1xf32> to vector<1x2x1xf32>
      %c0_19 = arith.constant 0 : index
      %c0_20 = arith.constant 0 : index
      %c0_21 = arith.constant 0 : index
      %27 = vector.load %arg4[%c0_19, %c0_20, %c0_21] : memref<1x2x1xf32, #tpu.memory_space<vmem>>, vector<1x2x1xf32>
      tpu.vector_store %arg4[%c0_19, %c0_20, %c0_21], %26 {strides = array<i32>} : memref<1x2x1xf32, #tpu.memory_space<vmem>>, vector<1x2x1xf32>,
    } else {
    }
    return
  }
  func.func @transform_0(%arg0: i32, %arg1: i32) -> (i32, i32, i32) {
    %c0_i32 = arith.constant 0 : i32
    %c0_i32_0 = arith.constant 0 : i32
    return %arg0, %arg1, %c0_i32 : i32, i32, i32
  }
  func.func @transform_1(%arg0: i32, %arg1: i32) -> (i32, i32, i32) {
    %c0_i32 = arith.constant 0 : i32
    %c0_i32_0 = arith.constant 0 : i32
    return %arg0, %arg1, %c0_i32 : i32, i32, i32
  }
  func.func @transform_2(%arg0: i32, %arg1: i32) -> (i32, i32, i32) {
    %c0_i32 = arith.constant 0 : i32
    %c0_i32_0 = arith.constant 0 : i32
    %c0_i32_1 = arith.constant 0 : i32
    return %arg0, %c0_i32, %c0_i32_0 : i32, i32, i32
  }
}

</mosaic_0001>

<bundles_post_ra>
// kernel: tpu_custom_call.1
= control target key start
LH: loop header
LB: loop body
LE: loop exit
PB: predicated region body
PF: predicated region fallthrough
CT: control target
= control target key end

     0   :  { %v70_v0 = vmov 0.0   ;;  %vm25_vm0 = vcmask 1045504   ;;  %vm42_vm1 = vcmask 1041409   ;;  %vm51_vm2 = vcmask 1041408   ;;  %s101_s0 = inlined_call_operand.vmem [shape: f32[2,6,128], index: 0, kind: input, shape index: {}]   ;;  %s102_s1 = inlined_call_operand.vmem [shape: f32[2,6,128], index: 1, kind: input, shape index: {}]   ;;  %s103_s2 = inlined_call_operand.vmem [shape: f32[1,2,1], index: 2, kind: output, shape index: {}]  }
   0x1   :  { %15 = vst [vmem:[#allocation2] sm:$0x3] %v70_v0  ;;  %v16_v1 = vld [vmem:[%s101_s0] sm:$0x3f]  ;;  %v17_v2 = vld [vmem:[%s101_s0 + $0x8] sm:$0x3f] }
   0x2   :  { %v18_v3 = vld [vmem:[%s102_s1] sm:$0x3f]  ;;  %v19_v4 = vld [vmem:[%s102_s1 + $0x8] sm:$0x3f]  ;;  %vm61_vm3 = vcmask 1024  }
   0x3   :  { %v20_v5 = vsub.f32 %v16_v1, %v18_v3  ;;  %v21_v6 = vsub.f32 %v17_v2, %v19_v4 }
   0x5   :  { %v23_v7 = vmul.f32 %v20_v5, %v20_v5  ;;  %v24_v8 = vmul.f32 %v21_v6, %v21_v6 }
   0x7   :  { %v26_v9 = vsel %vm25_vm0, %v23_v7, 0.0  ;;  %v33_v11 = vsel %vm25_vm0, %v24_v8, 0.0 }
   0x8   :  { %v27_v10 = vrot.slane %v26_v9, 4  ;;  %v34_v12 = vrot.slane %v33_v11, 4  ;;  %v22_v22 = vld [vmem:[#allocation2] sm:$0x3] }
   0xa   :  { %v28_v13 = vadd.f32 %v27_v10, %v26_v9  ;;  %v35_v14 = vadd.f32 %v34_v12, %v33_v11 }
   0xc   :  { %v29_v15 = vrot.slane %v28_v13, 2  ;;  %v36_v16 = vrot.slane %v35_v14, 2 }
   0xe   :  { %v30_v17 = vadd.f32 %v29_v15, %v28_v13  ;;  %v37_v18 = vadd.f32 %v36_v16, %v35_v14 }
  0x10   :  { %v31_v19 = vrot.slane %v30_v17, 1  ;;  %v38_v20 = vrot.slane %v37_v18, 1 }
  0x12   :  { %v32_v21 = vadd.f32 %v31_v19, %v30_v17  ;;  %v39_v23 = vadd.f32 %v38_v20, %v37_v18 }
  0x14   :  { %v43_v24 = vsel %vm42_vm1, %v39_v23, %v32_v21 }
  0x15   :  { %v45_v25 = vadd.f32 %v43_v24, %v22_v22 }
  0x17   :  { %46 = vst [vmem:[#allocation2] sm:$0x3] %v45_v25 }
  0x1e   :  { %v50_v26 = vld [vmem:[#allocation2] sm:$0x3] }
  0x1f   :  { %v52_v27 = vsel %vm51_vm2, %v50_v26, 0.0 }
  0x20   :  { %53 = vadd.xlane.f32.xlu0 %v52_v27 }
  0xa9   :  { %v54_v28 = vpop.xlane.xlu0 %53 }
  0xaa   :  { %v56_v29 = vmul.f32 0.0013020834, %v54_v28 }
  0xac   :  { %v57_v30 = vadd.f32 1e-08, %v56_v29 }
  0xae   :  { %68 = vlog2.f32 %v57_v30 }
  0xbb   :  { %v69_v31 = vpop.eup %68 }
  0xbc   :  { %v59_v32 = vmul.f32 0.6931472, %v69_v31 }
  0xbe   :  { %v60_v33 = vmul.f32 -4.3429446, %v59_v32 }
  0xc0   :  { %62 = vst.msk [vmem:[%s103_s2] sm:$0x3] %vm61_vm3, %v60_v33 }

</bundles_post_ra>
